<compile_context>
chip_gen: v7x
topology: tpu7x:2x2x1
jax: 0.10.0
libtpu: 0.0.40
codegen_flags: <defaults>
</compile_context>

<pallas_src>
import functools

import jax
import jax.numpy as jnp
from jax.experimental import pallas as pl
from jax.experimental.pallas import tpu as pltpu

IN_FEATURES = 73
HIDDEN = 64


def _table_encoder_kernel(x_ref, w1_ref, b1_ref, w2_ref, b2_ref, out_ref):
    """Fused 2-layer MLP tile: relu(x @ W1^T + b1) @ W2^T + b2.

    x_ref  : (TB, 73)   input feature tile (f32 or bf16 stream)
    w1_ref : (73, 64)   encoder_hidden_layer weight, pre-transposed (f32)
    b1_ref : (1, 64)    encoder_hidden_layer bias
    w2_ref : (64, E)    encoder_output_layer weight, pre-transposed (f32)
    b2_ref : (1, E)     encoder_output_layer bias
    out_ref: (TB, E)    code tile
    """
    x = x_ref[...].astype(jnp.float32)          # upcast (no-op for f32 stream)
    h = jnp.dot(x, w1_ref[...], preferred_element_type=jnp.float32)
    h = jnp.maximum(h + b1_ref[...], 0.0)       # bias + ReLU in f32 on the VPU
    code = jnp.dot(h, w2_ref[...], preferred_element_type=jnp.float32)
    out_ref[...] = (code + b2_ref[...]).astype(out_ref.dtype)


def prepare_table_encoder_params(w1, b1, w2, b2):
    """One-time weight prep (hoisted out of the per-call forward)."""
    w1t = jnp.asarray(w1, jnp.float32).T              # (73, 64)
    b1r = jnp.asarray(b1, jnp.float32).reshape(1, -1)  # (1, 64)
    w2t = jnp.asarray(w2, jnp.float32).T              # (64, E)
    b2r = jnp.asarray(b2, jnp.float32).reshape(1, -1)  # (1, E)
    return (w1t, b1r, w2t, b2r)


@functools.partial(jax.jit, static_argnames=("emb_shape", "block_b", "x_dtype"))
def table_encoder_forward(features, params, *, emb_shape, block_b=2048,
                          x_dtype=None):
    """features: (B, 73) (or (B, 1, 73)). Returns code: (B, emb_shape) f32.

    block_b: batch rows per grid step (largest tile that fits the VMEM budget).
    x_dtype: optional streaming dtype for the activations (e.g. jnp.bfloat16)
             to halve input HBM bytes at large B; accumulation stays f32.
    """
    w1t, b1r, w2t, b2r = params
    B = features.shape[0]
    x = features.reshape(B, -1)
    if x_dtype is not None:
        x = x.astype(x_dtype)
    K = x.shape[1]
    E = emb_shape

    # Batch tile: either the whole (small) batch, or a multiple-of-8 tile.
    tb = min(B, block_b)
    if tb != B:
        tb = max(8, (tb // 8) * 8)
    grid = (pl.cdiv(B, tb),)

    itemsize = jnp.dtype(x.dtype).itemsize
    cost = pl.CostEstimate(
        flops=2 * B * (K * HIDDEN + HIDDEN * E),
        transcendentals=0,
        bytes_accessed=B * K * itemsize + B * E * 4
        + (K * HIDDEN + HIDDEN + HIDDEN * E + E) * 4,
    )

    out = pl.pallas_call(
        _table_encoder_kernel,
        out_shape=jax.ShapeDtypeStruct((B, E), jnp.float32),
        grid=grid,
        in_specs=[
            pl.BlockSpec((tb, K), lambda i: (i, 0)),        # streamed x tile
            pl.BlockSpec((K, HIDDEN), lambda i: (0, 0)),    # VMEM-resident W1^T
            pl.BlockSpec((1, HIDDEN), lambda i: (0, 0)),    # b1
            pl.BlockSpec((HIDDEN, E), lambda i: (0, 0)),    # VMEM-resident W2^T
            pl.BlockSpec((1, E), lambda i: (0, 0)),         # b2
        ],
        out_specs=pl.BlockSpec((tb, E), lambda i: (i, 0)),
        compiler_params=pltpu.CompilerParams(
            dimension_semantics=("parallel",),   # shards batch across TCs (v7x)
            vmem_limit_bytes=32 * 1024 * 1024,   # explicit, fits v5e/v6e/v7x
        ),
        cost_estimate=cost,
    )(x, w1t, b1r, w2t, b2r)
    return out


def table_encoder_reference(features, w1, b1, w2, b2, emb_shape):
    """Pure-JAX reference matching the PyTorch forward."""
    bz = features.shape[0]
    hi = jax.lax.Precision.HIGHEST
    a = jnp.dot(features.reshape(bz, -1), w1.T, precision=hi) + b1
    a = jnp.squeeze(a)
    a = jnp.maximum(a, 0.0)
    code = (jnp.dot(a, w2.T, precision=hi) + b2).reshape(bz, emb_shape)
    return code


if __name__ == "__main__":
    EMB_SHAPE = 16

    key = jax.random.PRNGKey(0)
    kx, kX, k1, k2, k3, k4 = jax.random.split(key, 6)

    bound1 = 1.0 / jnp.sqrt(jnp.float32(IN_FEATURES))
    bound2 = 1.0 / jnp.sqrt(jnp.float32(HIDDEN))
    w1 = jax.random.uniform(k1, (HIDDEN, IN_FEATURES), jnp.float32, -bound1, bound1)
    b1 = jax.random.uniform(k2, (HIDDEN,), jnp.float32, -bound1, bound1)
    w2 = jax.random.uniform(k3, (EMB_SHAPE, HIDDEN), jnp.float32, -bound2, bound2)
    b2 = jax.random.uniform(k4, (EMB_SHAPE,), jnp.float32, -bound2, bound2)

    params = prepare_table_encoder_params(w1, b1, w2, b2)

    # 1) Small demo batch (single grid step, block == full array).
    x_small = jax.random.normal(kx, (2, IN_FEATURES), jnp.float32)
    y = jax.block_until_ready(
        table_encoder_forward(x_small, params, emb_shape=EMB_SHAPE))
    y_ref = table_encoder_reference(x_small, w1, b1, w2, b2, EMB_SHAPE)
    assert y.shape == (2, EMB_SHAPE), y.shape
    assert jnp.allclose(y, y_ref, atol=1e-4, rtol=1e-4), "small-batch mismatch"

    # 2) Larger batch exercising the pipelined / parallel batch grid (4 tiles).
    x_big = jax.random.normal(kX, (4096, IN_FEATURES), jnp.float32)
    yb = jax.block_until_ready(
        table_encoder_forward(x_big, params, emb_shape=EMB_SHAPE, block_b=1024))
    yb_ref = table_encoder_reference(x_big, w1, b1, w2, b2, EMB_SHAPE)
    assert yb.shape == (4096, EMB_SHAPE), yb.shape
    assert jnp.allclose(yb, yb_ref, atol=1e-4, rtol=1e-4), "big-batch mismatch"

    # 3) bf16-streamed activations (halves input HBM bytes; f32 accumulate).
    yh = jax.block_until_ready(
        table_encoder_forward(x_big, params, emb_shape=EMB_SHAPE, block_b=1024,
                              x_dtype=jnp.bfloat16))
    assert yh.shape == (4096, EMB_SHAPE), yh.shape
    assert jnp.allclose(yh, yb_ref, atol=1e-1, rtol=1e-1), "bf16-stream mismatch"

    print("KERNEL_OK")
</pallas_src>

<mosaic_0001>
module attributes {stable_mosaic.version = 11 : i64} {
  func.func @_table_encoder_kernel(%arg0: i32, %arg1: memref<2x73xf32, #tpu.memory_space<vmem>>, %arg2: memref<73x64xf32, #tpu.memory_space<vmem>>, %arg3: memref<1x64xf32, #tpu.memory_space<vmem>>, %arg4: memref<64x16xf32, #tpu.memory_space<vmem>>, %arg5: memref<1x16xf32, #tpu.memory_space<vmem>>, %arg6: memref<2x16xf32, #tpu.memory_space<vmem>>) attributes {dimension_semantics = [#tpu.dimension_semantics<parallel>], iteration_bounds = array<i64: 1>, scalar_prefetch = 0 : i64, scratch_operands = 0 : i64, tpu.core_type = #tpu.core_type<tc>, window_params = [{transform_indices = @transform_0, window_bounds = array<i64: 2, 73>}, {pipeline_mode = #tpu.pipeline_mode<synchronous>, transform_indices = @transform_1, window_bounds = array<i64: 73, 64>}, {pipeline_mode = #tpu.pipeline_mode<synchronous>, transform_indices = @transform_2, window_bounds = array<i64: 1, 64>}, {pipeline_mode = #tpu.pipeline_mode<synchronous>, transform_indices = @transform_3, window_bounds = array<i64: 64, 16>}, {pipeline_mode = #tpu.pipeline_mode<synchronous>, transform_indices = @transform_4, window_bounds = array<i64: 1, 16>}, {transform_indices = @transform_5, window_bounds = array<i64: 2, 16>}]} {
    %c0 = arith.constant 0 : index
    %c0_0 = arith.constant 0 : index
    %0 = vector.load %arg1[%c0, %c0_0] : memref<2x73xf32, #tpu.memory_space<vmem>>, vector<2x73xf32>
    %c0_1 = arith.constant 0 : index
    %c0_2 = arith.constant 0 : index
    %1 = vector.load %arg2[%c0_1, %c0_2] : memref<73x64xf32, #tpu.memory_space<vmem>>, vector<73x64xf32>
    %cst = arith.constant dense<0.000000e+00> : vector<2x64xf32>
    %2 = tpu.matmul %0, %1, %cst {dimension_numbers = #tpu.dot_dimension_numbers<[1], [0], [0], [1], [0, 0, 1, 1], [], []>} : vector<2x73xf32>, vector<73x64xf32>, vector<2x64xf32> -> vector<2x64xf32>
    %c0_3 = arith.constant 0 : index
    %c0_4 = arith.constant 0 : index
    %3 = vector.load %arg3[%c0_3, %c0_4] : memref<1x64xf32, #tpu.memory_space<vmem>>, vector<1x64xf32>
    %4 = vector.broadcast %3 : vector<1x64xf32> to vector<2x64xf32>
    %5 = arith.addf %2, %4 : vector<2x64xf32>
    %cst_5 = arith.constant 0.000000e+00 : f32
    %6 = vector.broadcast %cst_5 : f32 to vector<2x64xf32>
    %7 = arith.maximumf %5, %6 : vector<2x64xf32>
    %c0_6 = arith.constant 0 : index
    %c0_7 = arith.constant 0 : index
    %8 = vector.load %arg4[%c0_6, %c0_7] : memref<64x16xf32, #tpu.memory_space<vmem>>, vector<64x16xf32>
    %cst_8 = arith.constant dense<0.000000e+00> : vector<2x16xf32>
    %9 = tpu.matmul %7, %8, %cst_8 {dimension_numbers = #tpu.dot_dimension_numbers<[1], [0], [0], [1], [0, 0, 1, 1], [], []>} : vector<2x64xf32>, vector<64x16xf32>, vector<2x16xf32> -> vector<2x16xf32>
    %c0_9 = arith.constant 0 : index
    %c0_10 = arith.constant 0 : index
    %10 = vector.load %arg5[%c0_9, %c0_10] : memref<1x16xf32, #tpu.memory_space<vmem>>, vector<1x16xf32>
    %11 = vector.broadcast %10 : vector<1x16xf32> to vector<2x16xf32>
    %12 = arith.addf %9, %11 : vector<2x16xf32>
    %c0_11 = arith.constant 0 : index
    %c0_12 = arith.constant 0 : index
    %13 = vector.load %arg6[%c0_11, %c0_12] : memref<2x16xf32, #tpu.memory_space<vmem>>, vector<2x16xf32>
    tpu.vector_store %arg6[%c0_11, %c0_12], %12 {strides = array<i32>} : memref<2x16xf32, #tpu.memory_space<vmem>>, vector<2x16xf32>,
    return
  }
  func.func @transform_0(%arg0: i32) -> (i32, i32) {
    %c0_i32 = arith.constant 0 : i32
    %c0_i32_0 = arith.constant 0 : i32
    return %arg0, %c0_i32 : i32, i32
  }
  func.func @transform_1(%arg0: i32) -> (i32, i32) {
    %c0_i32 = arith.constant 0 : i32
    %c0_i32_0 = arith.constant 0 : i32
    %c0_i32_1 = arith.constant 0 : i32
    return %c0_i32, %c0_i32_0 : i32, i32
  }
  func.func @transform_2(%arg0: i32) -> (i32, i32) {
    %c0_i32 = arith.constant 0 : i32
    %c0_i32_0 = arith.constant 0 : i32
    %c0_i32_1 = arith.constant 0 : i32
    return %c0_i32, %c0_i32_0 : i32, i32
  }
  func.func @transform_3(%arg0: i32) -> (i32, i32) {
    %c0_i32 = arith.constant 0 : i32
    %c0_i32_0 = arith.constant 0 : i32
    %c0_i32_1 = arith.constant 0 : i32
    return %c0_i32, %c0_i32_0 : i32, i32
  }
  func.func @transform_4(%arg0: i32) -> (i32, i32) {
    %c0_i32 = arith.constant 0 : i32
    %c0_i32_0 = arith.constant 0 : i32
    %c0_i32_1 = arith.constant 0 : i32
    return %c0_i32, %c0_i32_0 : i32, i32
  }
  func.func @transform_5(%arg0: i32) -> (i32, i32) {
    %c0_i32 = arith.constant 0 : i32
    %c0_i32_0 = arith.constant 0 : i32
    return %arg0, %c0_i32 : i32, i32
  }
}

</mosaic_0001>

<bundles_post_ra>
// kernel: table_encoder_forward.1
= control target key start
LH: loop header
LB: loop body
LE: loop exit
PB: predicated region body
PF: predicated region fallthrough
CT: control target
= control target key end

     0   :  { %v347_v3 = vmov 0.0|0.0   ;;  %vm348_vm0 = vmmov 0   ;;  %v349_v6 = vmov 0.0   ;;  %s457_s0 = inlined_call_operand.vmem [shape: f32[2,73], index: 0, kind: input, shape index: {}]   ;;  %s458_s1 = inlined_call_operand.vmem [shape: f32[73,64], index: 1, kind: input, shape index: {}]   ;;  %s459_s2 = inlined_call_operand.vmem [shape: f32[1,64], index: 2, kind: input, shape index: {}]   ;;  %s460_s3 = inlined_call_operand.vmem [shape: f32[64,16], index: 3, kind: input, shape index: {}]   ;;  %s461_s4 = inlined_call_operand.vmem [shape: f32[1,16], index: 4, kind: input, shape index: {}]   ;;  %s462_s5 = inlined_call_operand.hbm [shape: f32[2,16], index: 5, kind: output, shape index: {}]  }
   0x1   :  { %v22_v0 = vld [vmem:[%s458_s1] sm:$0xff]  ;;  %v23_v1 = vld [vmem:[%s458_s1 + $0x8] sm:$0xff]  ;;  %v24_v2 = vld [vmem:[%s458_s1 + $0x10] sm:$0xff]  ;;  %290 = vmatprep.subr.bf16.mxu0 %v347_v3  ;;  %306 = vmatprep.subr.bf16.mxu1 %v347_v3 }
   0x2   :  { %v291_v4 = vpack.c.bf16 %v23_v1, %v22_v0  ;;  %v25_v5 = vld [vmem:[%s458_s1 + $0x18] sm:$0xff]  ;;  %268 = vmatprep.mubr.msk.f32.mxu0 %vm348_vm0, %v349_v6  ;;  %287 = vmatprep.mubr.msk.f32.mxu1 %vm348_vm0, %v349_v6  ;;  %v26_v8 = vld [vmem:[%s458_s1 + $0x20] sm:$0xff]  ;;  %v27_v9 = vld [vmem:[%s458_s1 + $0x28] sm:$0xff] }
   0x3   :  { %v294_v7 = vpack.c.bf16 %v25_v5, %v24_v2  ;;  %v118_v10 = vld [vmem:[%s460_s3] sm:$0xff]  ;;  %v119_v11 = vld [vmem:[%s460_s3 + $0x8] sm:$0xff]  ;;  %v120_v12 = vld [vmem:[%s460_s3 + $0x10] sm:$0xff] }
   0x4   :  { %292 = vmatpush3.bf16.msra.mxu0 %v291_v4  ;;  %v307_v13 = vpack.c.bf16 %v119_v11, %v118_v10  ;;  %v121_v14 = vld [vmem:[%s460_s3 + $0x18] sm:$0xff] }
   0x5   :  { %293 = vmatprep.subr.bf16.mxu0 %v347_v3 }
   0x6   :  { %10 = vsyncpa [#allocation3], 0  ;;  %v297_v15 = vpack.c.bf16 %v27_v9, %v26_v8  ;;  %v28_v16 = vld [vmem:[%s458_s1 + $0x30] sm:$0xff]  ;;  %308 = vmatpush3.bf16.msra.mxu1 %v307_v13  ;;  %v310_v17 = vpack.c.bf16 %v121_v14, %v120_v12  ;;  %v29_v18 = vld [vmem:[%s458_s1 + $0x38] sm:$0xff]  ;;  %vm43_vm1 = vcmask 1040384   ;;  %vm350_vm2 = vmmov 1  }
   0x7   :  { %309 = vmatprep.subr.bf16.mxu1 %v347_v3  ;;  %v122_v19 = vld [vmem:[%s460_s3 + $0x20] sm:$0xff]  ;;  %v123_v20 = vld [vmem:[%s460_s3 + $0x28] sm:$0xff]  ;;  %v300_v21 = vpack.c.bf16 %v29_v18, %v28_v16  ;;  %vm304_vm3 = vmpackc.low %vm43_vm1, %vm350_vm2  ;;  %vm39_vm4 = vcmask 596992   ;;  %vm133_vm5 = vcmask 523264   ;;  %s351_s8 = smov [#allocation2]   ;;  %vm207_vm6 = vcmask 123904  }
   0x8   :  { %295 = vmatpush3.bf16.msra.mxu0 %v294_v7  ;;  %v313_v22 = vpack.c.bf16 %v123_v20, %v122_v19  ;;  %v30_v23 = vld [vmem:[%s458_s1 + $0x40] sm:$0xff]  ;;  %v31_v24 = vld [vmem:[%s458_s1 + $0x48] sm:$0x1]  ;;  %v124_v27 = vld [vmem:[%s460_s3 + $0x30] sm:$0xff]  ;;  %s215_s9 = sshll.u32 %s351_s8, 4  ;;  %s216_s9 = int_to_ptr.vmem [resolvable:$true] %s215_s9 }
   0x9   :  { %296 = vmatprep.subr.bf16.mxu0 %v347_v3  ;;  %v303_v25 = vpack.c.bf16 %v31_v24, %v30_v23  ;;  %v21_v26 = vld [vmem:[%s457_s0] sm:$0x3]  ;;  %v125_v28 = vld [vmem:[%s460_s3 + $0x38] sm:$0xff]  ;;  %s323_s3 = scalar_lea.vmem %s216_s9, 32  ;;  %p328_p1 = scmp.lt.s32.totalorder %s216_s9, %s216_s9 }
   0xa   :  { %311 = vmatpush3.bf16.msra.mxu1 %v310_v17  ;;  %v316_v29 = vpack.c.bf16 %v125_v28, %v124_v27  ;;  %v223_v30 = vld [vmem:[%s459_s2] ss:$0 sm:$0xff]  ;;  %p324_p0 = scmp.ne.s32.totalorder %s216_s9, %s323_s3  ;;  %p329_p2 = scmp.lt.s32.totalorder %s323_s3, %s323_s3 }
   0xb   :  { %312 = vmatprep.subr.bf16.mxu1 %v347_v3  ;;  %v226_v35 = vld [vmem:[%s461_s4] ss:$0 sm:$0xff] }
   0xc   :  { %298 = vmatpush3.bf16.msra.mxu0 %v297_v15  ;;  %p330_p3 = por %p329_p2, %p328_p1 }
   0xd   :  { %299 = vmatprep.subr.bf16.mxu0 %v347_v3 }
   0xe   :  { %314 = vmatpush3.bf16.msra.mxu1 %v313_v22  ;;  %p331_p4 = pnand %p330_p3, %p324_p0 }
   0xf   :  { %315 = vmatprep.subr.bf16.mxu1 %v347_v3 }
  0x10   :  { %301 = vmatpush3.bf16.msra.mxu0 %v300_v21 }
  0x11   :  { %302 = vmatprep.subr.bf16.mxu0 %v347_v3 }
  0x12   :  { %317 = vmatpush3.bf16.msra.mxu1 %v316_v29 }
  0x14   :  { %305 = vmatpush3.bf16.msk.msra.mxu0 %vm304_vm3, %v303_v25 }
  0x17   :  { %269 = vmatmul.mubr.msk.f32.vlgmr.msra.gmra.mrb[0].mxu0 %vm39_vm4, %v21_v26 }
  0xea   :  { %v113_v31 = vpop.f32.mrb[0].mxu0 }
  0xeb   :  { %v114_v32 = vadd.f32 %v223_v30, %v113_v31  ;;  %v270_v33 = vpop.f32.mrb[1].mxu0 }
  0xed   :  { %v117_v34 = vmax.f32 %v114_v32, 0.0 }
  0xef   :  { %288 = vmatmul.mubr.msk.f32.vlgmr.msra.gmra.mrb[0].mxu1 %vm133_vm5, %v117_v34 }
 0x1c2   :  { %v203_v36 = vpop.f32.mrb[0].mxu1 }
 0x1c3   :  { %v204_v37 = vadd.f32 %v226_v35, %v203_v36  ;;  %v289_v38 = vpop.f32.mrb[1].mxu1 }
 0x1c5   :  { %208 = vst.msk [vmem:[#allocation2] sm:$0x3] %vm207_vm6, %v204_v37 }
 0x1c6   :  { %334 = shalt.err (!%p331_p4)
}
 0x1c7   :  { %s335_s11 = scalar_lea.hbm %s462_s5, 32 }
 0x1c8   :  { %p336_p5 = scmp.ne.s32.totalorder %s462_s5, %s335_s11  ;;  %p339_p6 = scmp.lt.u32.totalorder %s335_s11, %s462_s5 }
 0x1ca   :  { %p341_p7 = pnand %p339_p6, %p336_p5 }
 0x1cc   :  { %344 = shalt.err (!%p341_p7)
}
 0x1cd   :  { %218 = dma.vmem_to_hbm [thread:$0]  %s216_s9, 32, %s462_s5, [#allocation3]  }
 0x1ce   :  { %345 = dma.done.wait [#allocation3], 32  }
 0x1cf   :  { %346 = vsyncadd [#allocation3], 4294967264 }
 0x1d0   :  { %222 = vsyncpa [#allocation3], 1 }

</bundles_post_ra>
